<compile_context>
chip_gen: v5e
topology: v5e:2x2
jax: 0.10.0
libtpu: 0.0.40
codegen_flags: <defaults>
</compile_context>

<pallas_src>
import jax
import jax.numpy as jnp
import numpy as np
from jax.experimental import pallas as pl
from jax.experimental.pallas import tpu as pltpu


# ---------------------------------------------------------------------------
# Pallas kernel: fused start/end MLPs + biaffine bilinear scoring
# ---------------------------------------------------------------------------
def _make_biaffine_kernel(TL, L, H, F, O, compute_dtype):
    cd = compute_dtype

    def kernel(lens_ref, x_ref, ws_ref, bs_ref, we_ref, be_ref,
               w11_ref, ws1_ref, w1et_ref, wbb_ref, out_ref):
        # lens_ref : SMEM (B,) int32     (scalar-prefetched sentence lengths)
        # x_ref    : (1, L, H)           one sentence of contextualized embeddings
        # ws/we    : (H, F)              start/end MLP weights (y = x @ W)
        # bs/be    : (1, F)              start/end MLP biases (f32)
        # w11_ref  : (O, F, F)           biaffine core  W[o, :F, :F]
        # ws1_ref  : (F, O)              start-bias     W[o, i, F]
        # w1et_ref : (O, F)              end-bias       W[o, F, j]
        # wbb_ref  : (O, 1)              constant       W[o, F, F]
        # out_ref  : (1, TL, O*L)        scores[start_tile_row, o*L + end]
        b = pl.program_id(0)
        lt = pl.program_id(1)
        row0 = pl.multiple_of(lt * TL, TL)
        valid = row0 < lens_ref[b]          # tile has at least one real start position

        @pl.when(valid)
        def _compute():
            x_full = x_ref[0]                                           # [L, H]
            xs = x_full if TL == L else x_ref[0, pl.ds(row0, TL), :]    # [TL, H]

            # Start / end MLPs: single fused matmuls, f32 accumulation.
            s = jnp.dot(xs, ws_ref[...], preferred_element_type=jnp.float32) + bs_ref[...]
            e = jnp.dot(x_full, we_ref[...], preferred_element_type=jnp.float32) + be_ref[...]
            s_c = s.astype(cd)                                          # [TL, F]
            eT = e.T.astype(cd)                                         # [F, L]  (one transpose)

            # End-side bias rows: R[o, y] = sum_j W[o,F,j] * e[y,j] + W[o,F,F]
            R = jnp.dot(w1et_ref[...], eT,
                        preferred_element_type=jnp.float32) + wbb_ref[...]   # [O, L]

            for o in range(O):   # static, small label space
                # blk[i, y] = sum_j W[o,i,j] e[y,j]  (+ start-bias column folded in)
                blk = jnp.dot(w11_ref[o], eT, preferred_element_type=jnp.float32)  # [F, L]
                blk = blk + ws1_ref[:, o:o + 1]
                sc = jnp.dot(s_c, blk.astype(cd),
                             preferred_element_type=jnp.float32)                   # [TL, L]
                # Contiguous lane-slice store into the lane-dense output slab.
                out_ref[0, :, o * L:(o + 1) * L] = sc + R[o:o + 1, :]

        @pl.when(jnp.logical_not(valid))
        def _skip():
            # Fully padded start rows: downstream candidate mask drops them anyway.
            out_ref[...] = jnp.zeros_like(out_ref)

    return kernel


def biaffine_scores_pallas(emb, sent_lengths, start_w, start_b, end_w, end_b, biaffine_w,
                           compute_dtype=jnp.float32):
    """emb: [B, L, H] -> raw biaffine scores [B, L_start, O*L_end] (column = o*L + end).

    Equivalent to einsum('bxi,oij,byj->bxoy') over the ones-augmented MLP outputs,
    flattened over (o, y).  Reshape to [B, L, O, L] outside (free)."""
    B, L, H = emb.shape
    F = start_w.shape[0]          # nn.Linear weight layout: (ffnn_size, hidden_size)
    O = biaffine_w.shape[0]
    assert biaffine_w.shape == (O, F + 1, F + 1)

    # L_start tiling: keeps the (per-step) output block bounded for v7x's 64 MiB VMEM
    # and gives both TensorCores work even at small batch.
    TL = 128 if (L % 128 == 0) else L
    nLT = L // TL

    cd = compute_dtype
    x = emb.astype(cd)
    ws = start_w.T.astype(cd)                       # (H, F)
    we = end_w.T.astype(cd)                         # (H, F)
    bs = start_b.reshape(1, F).astype(jnp.float32)
    be = end_b.reshape(1, F).astype(jnp.float32)
    w = biaffine_w.astype(jnp.float32)
    w11 = w[:, :F, :F].astype(cd)                   # (O, F, F)
    ws1 = jnp.transpose(w[:, :F, F])                # (F, O)  start-bias columns (f32)
    w1et = w[:, F, :F].astype(cd)                   # (O, F)  end-bias rows
    wbb = w[:, F, F].reshape(O, 1)                  # (O, 1)  constant term (f32)
    lens = sent_lengths.astype(jnp.int32)

    kernel = _make_biaffine_kernel(TL, L, H, F, O, cd)

    # Raise the scoped-VMEM limit only when the working set actually needs it.
    isz = jnp.dtype(cd).itemsize
    est = (2 * (L * H * isz + TL * O * L * 4)                         # double-buffered x + out
           + (2 * H * F + O * F * F + O * F) * isz + (F * O + O) * 4  # weights
           + (F * L + O * L + TL * L) * 4)                            # in-kernel intermediates
    vmem_limit = int(min(1.5 * est, 100 * 2 ** 20)) if est > 24 * 2 ** 20 else None

    grid_spec = pltpu.PrefetchScalarGridSpec(
        num_scalar_prefetch=1,
        grid=(B, nLT),
        in_specs=[
            pl.BlockSpec((1, L, H), lambda b, lt, ln: (b, 0, 0)),
            pl.BlockSpec((H, F), lambda b, lt, ln: (0, 0)),
            pl.BlockSpec((1, F), lambda b, lt, ln: (0, 0)),
            pl.BlockSpec((H, F), lambda b, lt, ln: (0, 0)),
            pl.BlockSpec((1, F), lambda b, lt, ln: (0, 0)),
            pl.BlockSpec((O, F, F), lambda b, lt, ln: (0, 0, 0)),
            pl.BlockSpec((F, O), lambda b, lt, ln: (0, 0)),
            pl.BlockSpec((O, F), lambda b, lt, ln: (0, 0)),
            pl.BlockSpec((O, 1), lambda b, lt, ln: (0, 0)),
        ],
        out_specs=pl.BlockSpec((1, TL, O * L), lambda b, lt, ln: (b, lt, 0)),
    )
    return pl.pallas_call(
        kernel,
        out_shape=jax.ShapeDtypeStruct((B, L, O * L), jnp.float32),
        grid_spec=grid_spec,
        compiler_params=pltpu.CompilerParams(
            dimension_semantics=("parallel", "parallel"),
            vmem_limit_bytes=vmem_limit),
    )(lens, x, ws, bs, we, be, w11, ws1, w1et, wbb)


# ---------------------------------------------------------------------------
# Plain-JAX glue reproducing decode(): masking, candidate gather, dense labels, loss
# ---------------------------------------------------------------------------
def biaffine_ner_decoder_forward(emb, sent_lengths, params,
                                 gold_starts=None, gold_ends=None, gold_labels=None,
                                 loss_reduction='sum', compute_dtype=jnp.float32):
    B, L, H = emb.shape
    O = params['biaffine_w'].shape[0]

    scores_flat = biaffine_scores_pallas(
        emb, sent_lengths,
        params['start_w'], params['start_b'],
        params['end_w'], params['end_b'],
        params['biaffine_w'],
        compute_dtype=compute_dtype)                     # [B, L, O*L]
    scores = scores_flat.reshape(B, L, O, L)             # [b, start, o, end] (free reshape)

    lens = sent_lengths.astype(jnp.int32)
    mask = jnp.arange(L)[None, :] < lens[:, None]                                 # [B, L]
    cand_mask = mask[:, :, None] & mask[:, None, :]                               # [B, L, L]
    cand_mask &= (jnp.arange(L)[None, :] >= jnp.arange(L)[:, None])[None]         # end >= start

    # Ragged (data-dependent size) gather -> eager plain JAX.  Integer-index gather on the
    # [b, start, o, end] layout gives exactly scores.permute([0,2,3,1])[cand_mask]
    # without ever materializing the permuted tensor.
    bi, si, ei = jnp.nonzero(cand_mask)
    candidate_ner_scores = scores[bi, si, :, ei]                                  # [N, O]
    predict = {'candidate_ner_scores': candidate_ner_scores}

    if gold_starts is not None:
        # get_dense_span_labels: sparse scatter of gold labels at (b, start, end).
        # Duplicate (b,start,end) entries sum, matching torch sparse .to_dense().
        sent_idx = jnp.broadcast_to(jnp.arange(B)[:, None], gold_starts.shape)
        dense_labels = jnp.zeros((B, L, L), jnp.int32).at[
            sent_idx, gold_starts, gold_ends].add(gold_labels)
        gold = dense_labels[bi, si, ei]                                           # [N]
        # cross_entropy(candidate_ner_scores, gold, reduction=...)
        lse = jax.nn.logsumexp(candidate_ner_scores, axis=-1)
        picked = jnp.take_along_axis(candidate_ner_scores, gold[:, None], axis=-1)[:, 0]
        nll = lse - picked
        loss = nll.sum() if loss_reduction == 'sum' else nll.mean()
        predict['loss'] = loss
    return predict


# ---------------------------------------------------------------------------
if __name__ == "__main__":
    B, L, H, F, O = 2, 8, 32, 32, 8   # batch, seq, hidden_size, ffnn_size, label_space_size

    key = jax.random.PRNGKey(0)
    k = jax.random.split(key, 6)
    emb = jax.random.normal(k[0], (B, L, H), jnp.float32)

    # Deterministic synthetic parameters (nn.Linear weights are [ffnn, hidden]).
    params = {
        'start_w': jax.random.normal(k[1], (F, H), jnp.float32) * 0.1,
        'start_b': jax.random.normal(k[2], (F,), jnp.float32) * 0.1,
        'end_w': jax.random.normal(k[3], (F, H), jnp.float32) * 0.1,
        'end_b': jax.random.normal(k[4], (F,), jnp.float32) * 0.1,
        'biaffine_w': jax.random.normal(k[5], (O, F + 1, F + 1), jnp.float32) * 0.1,
    }

    sent_lengths = jnp.array([8, 5], jnp.int32)
    gold_starts = jnp.array([[0, 2, 0], [1, 0, 0]], jnp.int32)
    gold_ends = jnp.array([[1, 4, 0], [3, 0, 0]], jnp.int32)
    gold_labels = jnp.array([[2, 3, 0], [1, 0, 0]], jnp.int32)

    out = biaffine_ner_decoder_forward(emb, sent_lengths, params,
                                       gold_starts, gold_ends, gold_labels)
    jax.block_until_ready(out['candidate_ner_scores'])
    jax.block_until_ready(out['loss'])

    # Reference check of the kernel hot path against plain-JAX einsum.
    # Start rows beyond the sentence length may be zero-skipped by the kernel,
    # so compare only within valid start rows (downstream masking ignores the rest).
    got = biaffine_scores_pallas(emb, sent_lengths,
                                 params['start_w'], params['start_b'],
                                 params['end_w'], params['end_b'],
                                 params['biaffine_w']).reshape(B, L, O, L)
    s_ref = emb @ params['start_w'].T + params['start_b']
    e_ref = emb @ params['end_w'].T + params['end_b']
    ones = jnp.ones((B, L, 1), jnp.float32)
    s_aug = jnp.concatenate([s_ref, ones], -1)
    e_aug = jnp.concatenate([e_ref, ones], -1)
    ref = jnp.einsum('bxi,oij,byj->bxoy', s_aug, params['biaffine_w'], e_aug)   # [B, L, O, L]
    row_ok = (jnp.arange(L)[None, :] < sent_lengths[:, None]
              ).astype(jnp.float32)[:, :, None, None]
    assert np.allclose(np.asarray(got * row_ok), np.asarray(ref * row_ok),
                       atol=1e-3, rtol=1e-3)

    print("KERNEL_OK")
</pallas_src>

<mosaic_0001>
module attributes {stable_mosaic.version = 11 : i64} {
  func.func @kernel(%arg0: i32, %arg1: i32, %arg2: memref<2xi32, #tpu.memory_space<smem>>, %arg3: memref<1x8x32xf32, #tpu.memory_space<vmem>>, %arg4: memref<32x32xf32, #tpu.memory_space<vmem>>, %arg5: memref<1x32xf32, #tpu.memory_space<vmem>>, %arg6: memref<32x32xf32, #tpu.memory_space<vmem>>, %arg7: memref<1x32xf32, #tpu.memory_space<vmem>>, %arg8: memref<8x32x32xf32, #tpu.memory_space<vmem>>, %arg9: memref<32x8xf32, #tpu.memory_space<vmem>>, %arg10: memref<8x32xf32, #tpu.memory_space<vmem>>, %arg11: memref<8x1xf32, #tpu.memory_space<vmem>>, %arg12: memref<1x8x64xf32, #tpu.memory_space<vmem>>) attributes {dimension_semantics = [#tpu.dimension_semantics<parallel>, #tpu.dimension_semantics<parallel>], iteration_bounds = array<i64: 2, 1>, scalar_prefetch = 1 : i64, scratch_operands = 0 : i64, tpu.core_type = #tpu.core_type<tc>, window_params = [{transform_indices = @transform_0, window_bounds = array<i64: 1, 8, 32>}, {pipeline_mode = #tpu.pipeline_mode<synchronous>, transform_indices = @transform_1, window_bounds = array<i64: 32, 32>}, {pipeline_mode = #tpu.pipeline_mode<synchronous>, transform_indices = @transform_2, window_bounds = array<i64: 1, 32>}, {pipeline_mode = #tpu.pipeline_mode<synchronous>, transform_indices = @transform_3, window_bounds = array<i64: 32, 32>}, {pipeline_mode = #tpu.pipeline_mode<synchronous>, transform_indices = @transform_4, window_bounds = array<i64: 1, 32>}, {pipeline_mode = #tpu.pipeline_mode<synchronous>, transform_indices = @transform_5, window_bounds = array<i64: 8, 32, 32>}, {pipeline_mode = #tpu.pipeline_mode<synchronous>, transform_indices = @transform_6, window_bounds = array<i64: 32, 8>}, {pipeline_mode = #tpu.pipeline_mode<synchronous>, transform_indices = @transform_7, window_bounds = array<i64: 8, 32>}, {pipeline_mode = #tpu.pipeline_mode<synchronous>, transform_indices = @transform_8, window_bounds = array<i64: 8, 1>}, {transform_indices = @transform_9, window_bounds = array<i64: 1, 8, 64>}]} {
    %c8_i32 = arith.constant 8 : i32
    %0 = arith.muli %arg1, %c8_i32 : i32
    %1 = tpu.assume_multiple %0, 8 : i32
    %2 = arith.index_cast %arg0 : i32 to index
    %3 = memref.load %arg2[%2] : memref<2xi32, #tpu.memory_space<smem>>
    %4 = arith.cmpi slt, %1, %3 : i32
    %5 = arith.extui %4 : i1 to i32
    %c0_i32 = arith.constant 0 : i32
    %6 = arith.cmpi ne, %5, %c0_i32 : i32
    scf.if %6 {
      %c0 = arith.constant 0 : index
      %c0_1 = arith.constant 0 : index
      %c0_2 = arith.constant 0 : index
      %10 = vector.load %arg3[%c0, %c0_1, %c0_2] : memref<1x8x32xf32, #tpu.memory_space<vmem>>, vector<1x8x32xf32>
      %11 = vector.shape_cast %10 : vector<1x8x32xf32> to vector<8x32xf32>
      %c0_3 = arith.constant 0 : index
      %c0_4 = arith.constant 0 : index
      %12 = vector.load %arg4[%c0_3, %c0_4] : memref<32x32xf32, #tpu.memory_space<vmem>>, vector<32x32xf32>
      %cst = arith.constant dense<0.000000e+00> : vector<8x32xf32>
      %13 = tpu.matmul %11, %12, %cst {dimension_numbers = #tpu.dot_dimension_numbers<[1], [0], [0], [1], [0, 0, 1, 1], [], []>} : vector<8x32xf32>, vector<32x32xf32>, vector<8x32xf32> -> vector<8x32xf32>
      %c0_5 = arith.constant 0 : index
      %c0_6 = arith.constant 0 : index
      %14 = vector.load %arg5[%c0_5, %c0_6] : memref<1x32xf32, #tpu.memory_space<vmem>>, vector<1x32xf32>
      %15 = vector.broadcast %14 : vector<1x32xf32> to vector<8x32xf32>
      %16 = arith.addf %13, %15 : vector<8x32xf32>
      %c0_7 = arith.constant 0 : index
      %c0_8 = arith.constant 0 : index
      %17 = vector.load %arg6[%c0_7, %c0_8] : memref<32x32xf32, #tpu.memory_space<vmem>>, vector<32x32xf32>
      %cst_9 = arith.constant dense<0.000000e+00> : vector<8x32xf32>
      %18 = tpu.matmul %11, %17, %cst_9 {dimension_numbers = #tpu.dot_dimension_numbers<[1], [0], [0], [1], [0, 0, 1, 1], [], []>} : vector<8x32xf32>, vector<32x32xf32>, vector<8x32xf32> -> vector<8x32xf32>
      %c0_10 = arith.constant 0 : index
      %c0_11 = arith.constant 0 : index
      %19 = vector.load %arg7[%c0_10, %c0_11] : memref<1x32xf32, #tpu.memory_space<vmem>>, vector<1x32xf32>
      %20 = vector.broadcast %19 : vector<1x32xf32> to vector<8x32xf32>
      %21 = arith.addf %18, %20 : vector<8x32xf32>
      %22 = tpu.transpose %21, [1, 0] : vector<8x32xf32> -> vector<32x8xf32>
      %c0_12 = arith.constant 0 : index
      %c0_13 = arith.constant 0 : index
      %23 = vector.load %arg10[%c0_12, %c0_13] : memref<8x32xf32, #tpu.memory_space<vmem>>, vector<8x32xf32>
      %cst_14 = arith.constant dense<0.000000e+00> : vector<8x8xf32>
      %24 = tpu.matmul %23, %22, %cst_14 {dimension_numbers = #tpu.dot_dimension_numbers<[1], [0], [0], [1], [0, 0, 1, 1], [], []>} : vector<8x32xf32>, vector<32x8xf32>, vector<8x8xf32> -> vector<8x8xf32>
      %c0_15 = arith.constant 0 : index
      %c0_16 = arith.constant 0 : index
      %25 = vector.load %arg11[%c0_15, %c0_16] : memref<8x1xf32, #tpu.memory_space<vmem>>, vector<8x1xf32>
      %26 = vector.broadcast %25 : vector<8x1xf32> to vector<8x8xf32>
      %27 = arith.addf %24, %26 : vector<8x8xf32>
      %c0_17 = arith.constant 0 : index
      %c0_18 = arith.constant 0 : index
      %c0_19 = arith.constant 0 : index
      %28 = vector.load %arg8[%c0_17, %c0_18, %c0_19] : memref<8x32x32xf32, #tpu.memory_space<vmem>>, vector<1x32x32xf32>
      %29 = vector.shape_cast %28 : vector<1x32x32xf32> to vector<32x32xf32>
      %cst_20 = arith.constant dense<0.000000e+00> : vector<32x8xf32>
      %30 = tpu.matmul %29, %22, %cst_20 {dimension_numbers = #tpu.dot_dimension_numbers<[1], [0], [0], [1], [0, 0, 1, 1], [], []>} : vector<32x32xf32>, vector<32x8xf32>, vector<32x8xf32> -> vector<32x8xf32>
      %c0_21 = arith.constant 0 : index
      %c0_22 = arith.constant 0 : index
      %31 = vector.load %arg9[%c0_21, %c0_22] : memref<32x8xf32, #tpu.memory_space<vmem>>, vector<32x1xf32>
      %32 = vector.broadcast %31 : vector<32x1xf32> to vector<32x8xf32>
      %33 = arith.addf %30, %32 : vector<32x8xf32>
      %cst_23 = arith.constant dense<0.000000e+00> : vector<8x8xf32>
      %34 = tpu.matmul %16, %33, %cst_23 {dimension_numbers = #tpu.dot_dimension_numbers<[1], [0], [0], [1], [0, 0, 1, 1], [], []>} : vector<8x32xf32>, vector<32x8xf32>, vector<8x8xf32> -> vector<8x8xf32>
      %35 = vector.extract_strided_slice %27 {offsets = [0, 0], sizes = [1, 8], strides = [1, 1]} : vector<8x8xf32> to vector<1x8xf32>
      %36 = vector.broadcast %35 : vector<1x8xf32> to vector<8x8xf32>
      %37 = arith.addf %34, %36 : vector<8x8xf32>
      %c0_24 = arith.constant 0 : index
      %c0_25 = arith.constant 0 : index
      %c0_26 = arith.constant 0 : index
      %38 = vector.load %arg12[%c0_24, %c0_25, %c0_26] : memref<1x8x64xf32, #tpu.memory_space<vmem>>, vector<1x8x8xf32>
      %39 = vector.shape_cast %38 : vector<1x8x8xf32> to vector<8x8xf32>
      %40 = vector.shape_cast %37 : vector<8x8xf32> to vector<1x8x8xf32>
      tpu.vector_store %arg12[%c0_24, %c0_25, %c0_26], %40 {strides = array<i32>} : memref<1x8x64xf32, #tpu.memory_space<vmem>>, vector<1x8x8xf32>,
      %c1 = arith.constant 1 : index
      %c0_27 = arith.constant 0 : index
      %c0_28 = arith.constant 0 : index
      %41 = vector.load %arg8[%c1, %c0_27, %c0_28] : memref<8x32x32xf32, #tpu.memory_space<vmem>>, vector<1x32x32xf32>
      %42 = vector.shape_cast %41 : vector<1x32x32xf32> to vector<32x32xf32>
      %cst_29 = arith.constant dense<0.000000e+00> : vector<32x8xf32>
      %43 = tpu.matmul %42, %22, %cst_29 {dimension_numbers = #tpu.dot_dimension_numbers<[1], [0], [0], [1], [0, 0, 1, 1], [], []>} : vector<32x32xf32>, vector<32x8xf32>, vector<32x8xf32> -> vector<32x8xf32>
      %c0_30 = arith.constant 0 : index
      %c1_31 = arith.constant 1 : index
      %44 = vector.load %arg9[%c0_30, %c1_31] : memref<32x8xf32, #tpu.memory_space<vmem>>, vector<32x1xf32>
      %45 = vector.broadcast %44 : vector<32x1xf32> to vector<32x8xf32>
      %46 = arith.addf %43, %45 : vector<32x8xf32>
      %cst_32 = arith.constant dense<0.000000e+00> : vector<8x8xf32>
      %47 = tpu.matmul %16, %46, %cst_32 {dimension_numbers = #tpu.dot_dimension_numbers<[1], [0], [0], [1], [0, 0, 1, 1], [], []>} : vector<8x32xf32>, vector<32x8xf32>, vector<8x8xf32> -> vector<8x8xf32>
      %48 = vector.extract_strided_slice %27 {offsets = [1, 0], sizes = [1, 8], strides = [1, 1]} : vector<8x8xf32> to vector<1x8xf32>
      %49 = vector.broadcast %48 : vector<1x8xf32> to vector<8x8xf32>
      %50 = arith.addf %47, %49 : vector<8x8xf32>
      %c0_33 = arith.constant 0 : index
      %c0_34 = arith.constant 0 : index
      %c8 = arith.constant 8 : index
      %51 = vector.load %arg12[%c0_33, %c0_34, %c8] : memref<1x8x64xf32, #tpu.memory_space<vmem>>, vector<1x8x8xf32>
      %52 = vector.shape_cast %51 : vector<1x8x8xf32> to vector<8x8xf32>
      %53 = vector.shape_cast %50 : vector<8x8xf32> to vector<1x8x8xf32>
      tpu.vector_store %arg12[%c0_33, %c0_34, %c8], %53 {strides = array<i32>} : memref<1x8x64xf32, #tpu.memory_space<vmem>>, vector<1x8x8xf32>,
      %c2 = arith.constant 2 : index
      %c0_35 = arith.constant 0 : index
      %c0_36 = arith.constant 0 : index
      %54 = vector.load %arg8[%c2, %c0_35, %c0_36] : memref<8x32x32xf32, #tpu.memory_space<vmem>>, vector<1x32x32xf32>
      %55 = vector.shape_cast %54 : vector<1x32x32xf32> to vector<32x32xf32>
      %cst_37 = arith.constant dense<0.000000e+00> : vector<32x8xf32>
      %56 = tpu.matmul %55, %22, %cst_37 {dimension_numbers = #tpu.dot_dimension_numbers<[1], [0], [0], [1], [0, 0, 1, 1], [], []>} : vector<32x32xf32>, vector<32x8xf32>, vector<32x8xf32> -> vector<32x8xf32>
      %c0_38 = arith.constant 0 : index
      %c2_39 = arith.constant 2 : index
      %57 = vector.load %arg9[%c0_38, %c2_39] : memref<32x8xf32, #tpu.memory_space<vmem>>, vector<32x1xf32>
      %58 = vector.broadcast %57 : vector<32x1xf32> to vector<32x8xf32>
      %59 = arith.addf %56, %58 : vector<32x8xf32>
      %cst_40 = arith.constant dense<0.000000e+00> : vector<8x8xf32>
      %60 = tpu.matmul %16, %59, %cst_40 {dimension_numbers = #tpu.dot_dimension_numbers<[1], [0], [0], [1], [0, 0, 1, 1], [], []>} : vector<8x32xf32>, vector<32x8xf32>, vector<8x8xf32> -> vector<8x8xf32>
      %61 = vector.extract_strided_slice %27 {offsets = [2, 0], sizes = [1, 8], strides = [1, 1]} : vector<8x8xf32> to vector<1x8xf32>
      %62 = vector.broadcast %61 : vector<1x8xf32> to vector<8x8xf32>
      %63 = arith.addf %60, %62 : vector<8x8xf32>
      %c0_41 = arith.constant 0 : index
      %c0_42 = arith.constant 0 : index
      %c16 = arith.constant 16 : index
      %64 = vector.load %arg12[%c0_41, %c0_42, %c16] : memref<1x8x64xf32, #tpu.memory_space<vmem>>, vector<1x8x8xf32>
      %65 = vector.shape_cast %64 : vector<1x8x8xf32> to vector<8x8xf32>
      %66 = vector.shape_cast %63 : vector<8x8xf32> to vector<1x8x8xf32>
      tpu.vector_store %arg12[%c0_41, %c0_42, %c16], %66 {strides = array<i32>} : memref<1x8x64xf32, #tpu.memory_space<vmem>>, vector<1x8x8xf32>,
      %c3 = arith.constant 3 : index
      %c0_43 = arith.constant 0 : index
      %c0_44 = arith.constant 0 : index
      %67 = vector.load %arg8[%c3, %c0_43, %c0_44] : memref<8x32x32xf32, #tpu.memory_space<vmem>>, vector<1x32x32xf32>
      %68 = vector.shape_cast %67 : vector<1x32x32xf32> to vector<32x32xf32>
      %cst_45 = arith.constant dense<0.000000e+00> : vector<32x8xf32>
      %69 = tpu.matmul %68, %22, %cst_45 {dimension_numbers = #tpu.dot_dimension_numbers<[1], [0], [0], [1], [0, 0, 1, 1], [], []>} : vector<32x32xf32>, vector<32x8xf32>, vector<32x8xf32> -> vector<32x8xf32>
      %c0_46 = arith.constant 0 : index
      %c3_47 = arith.constant 3 : index
      %70 = vector.load %arg9[%c0_46, %c3_47] : memref<32x8xf32, #tpu.memory_space<vmem>>, vector<32x1xf32>
      %71 = vector.broadcast %70 : vector<32x1xf32> to vector<32x8xf32>
      %72 = arith.addf %69, %71 : vector<32x8xf32>
      %cst_48 = arith.constant dense<0.000000e+00> : vector<8x8xf32>
      %73 = tpu.matmul %16, %72, %cst_48 {dimension_numbers = #tpu.dot_dimension_numbers<[1], [0], [0], [1], [0, 0, 1, 1], [], []>} : vector<8x32xf32>, vector<32x8xf32>, vector<8x8xf32> -> vector<8x8xf32>
      %74 = vector.extract_strided_slice %27 {offsets = [3, 0], sizes = [1, 8], strides = [1, 1]} : vector<8x8xf32> to vector<1x8xf32>
      %75 = vector.broadcast %74 : vector<1x8xf32> to vector<8x8xf32>
      %76 = arith.addf %73, %75 : vector<8x8xf32>
      %c0_49 = arith.constant 0 : index
      %c0_50 = arith.constant 0 : index
      %c24 = arith.constant 24 : index
      %77 = vector.load %arg12[%c0_49, %c0_50, %c24] : memref<1x8x64xf32, #tpu.memory_space<vmem>>, vector<1x8x8xf32>
      %78 = vector.shape_cast %77 : vector<1x8x8xf32> to vector<8x8xf32>
      %79 = vector.shape_cast %76 : vector<8x8xf32> to vector<1x8x8xf32>
      tpu.vector_store %arg12[%c0_49, %c0_50, %c24], %79 {strides = array<i32>} : memref<1x8x64xf32, #tpu.memory_space<vmem>>, vector<1x8x8xf32>,
      %c4 = arith.constant 4 : index
      %c0_51 = arith.constant 0 : index
      %c0_52 = arith.constant 0 : index
      %80 = vector.load %arg8[%c4, %c0_51, %c0_52] : memref<8x32x32xf32, #tpu.memory_space<vmem>>, vector<1x32x32xf32>
      %81 = vector.shape_cast %80 : vector<1x32x32xf32> to vector<32x32xf32>
      %cst_53 = arith.constant dense<0.000000e+00> : vector<32x8xf32>
      %82 = tpu.matmul %81, %22, %cst_53 {dimension_numbers = #tpu.dot_dimension_numbers<[1], [0], [0], [1], [0, 0, 1, 1], [], []>} : vector<32x32xf32>, vector<32x8xf32>, vector<32x8xf32> -> vector<32x8xf32>
      %c0_54 = arith.constant 0 : index
      %c4_55 = arith.constant 4 : index
      %83 = vector.load %arg9[%c0_54, %c4_55] : memref<32x8xf32, #tpu.memory_space<vmem>>, vector<32x1xf32>
      %84 = vector.broadcast %83 : vector<32x1xf32> to vector<32x8xf32>
      %85 = arith.addf %82, %84 : vector<32x8xf32>
      %cst_56 = arith.constant dense<0.000000e+00> : vector<8x8xf32>
      %86 = tpu.matmul %16, %85, %cst_56 {dimension_numbers = #tpu.dot_dimension_numbers<[1], [0], [0], [1], [0, 0, 1, 1], [], []>} : vector<8x32xf32>, vector<32x8xf32>, vector<8x8xf32> -> vector<8x8xf32>
      %87 = vector.extract_strided_slice %27 {offsets = [4, 0], sizes = [1, 8], strides = [1, 1]} : vector<8x8xf32> to vector<1x8xf32>
      %88 = vector.broadcast %87 : vector<1x8xf32> to vector<8x8xf32>
      %89 = arith.addf %86, %88 : vector<8x8xf32>
      %c0_57 = arith.constant 0 : index
      %c0_58 = arith.constant 0 : index
      %c32 = arith.constant 32 : index
      %90 = vector.load %arg12[%c0_57, %c0_58, %c32] : memref<1x8x64xf32, #tpu.memory_space<vmem>>, vector<1x8x8xf32>
      %91 = vector.shape_cast %90 : vector<1x8x8xf32> to vector<8x8xf32>
      %92 = vector.shape_cast %89 : vector<8x8xf32> to vector<1x8x8xf32>
      tpu.vector_store %arg12[%c0_57, %c0_58, %c32], %92 {strides = array<i32>} : memref<1x8x64xf32, #tpu.memory_space<vmem>>, vector<1x8x8xf32>,
      %c5 = arith.constant 5 : index
      %c0_59 = arith.constant 0 : index
      %c0_60 = arith.constant 0 : index
      %93 = vector.load %arg8[%c5, %c0_59, %c0_60] : memref<8x32x32xf32, #tpu.memory_space<vmem>>, vector<1x32x32xf32>
      %94 = vector.shape_cast %93 : vector<1x32x32xf32> to vector<32x32xf32>
      %cst_61 = arith.constant dense<0.000000e+00> : vector<32x8xf32>
      %95 = tpu.matmul %94, %22, %cst_61 {dimension_numbers = #tpu.dot_dimension_numbers<[1], [0], [0], [1], [0, 0, 1, 1], [], []>} : vector<32x32xf32>, vector<32x8xf32>, vector<32x8xf32> -> vector<32x8xf32>
      %c0_62 = arith.constant 0 : index
      %c5_63 = arith.constant 5 : index
      %96 = vector.load %arg9[%c0_62, %c5_63] : memref<32x8xf32, #tpu.memory_space<vmem>>, vector<32x1xf32>
      %97 = vector.broadcast %96 : vector<32x1xf32> to vector<32x8xf32>
      %98 = arith.addf %95, %97 : vector<32x8xf32>
      %cst_64 = arith.constant dense<0.000000e+00> : vector<8x8xf32>
      %99 = tpu.matmul %16, %98, %cst_64 {dimension_numbers = #tpu.dot_dimension_numbers<[1], [0], [0], [1], [0, 0, 1, 1], [], []>} : vector<8x32xf32>, vector<32x8xf32>, vector<8x8xf32> -> vector<8x8xf32>
      %100 = vector.extract_strided_slice %27 {offsets = [5, 0], sizes = [1, 8], strides = [1, 1]} : vector<8x8xf32> to vector<1x8xf32>
      %101 = vector.broadcast %100 : vector<1x8xf32> to vector<8x8xf32>
      %102 = arith.addf %99, %101 : vector<8x8xf32>
      %c0_65 = arith.constant 0 : index
      %c0_66 = arith.constant 0 : index
      %c40 = arith.constant 40 : index
      %103 = vector.load %arg12[%c0_65, %c0_66, %c40] : memref<1x8x64xf32, #tpu.memory_space<vmem>>, vector<1x8x8xf32>
      %104 = vector.shape_cast %103 : vector<1x8x8xf32> to vector<8x8xf32>
      %105 = vector.shape_cast %102 : vector<8x8xf32> to vector<1x8x8xf32>
      tpu.vector_store %arg12[%c0_65, %c0_66, %c40], %105 {strides = array<i32>} : memref<1x8x64xf32, #tpu.memory_space<vmem>>, vector<1x8x8xf32>,
      %c6 = arith.constant 6 : index
      %c0_67 = arith.constant 0 : index
      %c0_68 = arith.constant 0 : index
      %106 = vector.load %arg8[%c6, %c0_67, %c0_68] : memref<8x32x32xf32, #tpu.memory_space<vmem>>, vector<1x32x32xf32>
      %107 = vector.shape_cast %106 : vector<1x32x32xf32> to vector<32x32xf32>
      %cst_69 = arith.constant dense<0.000000e+00> : vector<32x8xf32>
      %108 = tpu.matmul %107, %22, %cst_69 {dimension_numbers = #tpu.dot_dimension_numbers<[1], [0], [0], [1], [0, 0, 1, 1], [], []>} : vector<32x32xf32>, vector<32x8xf32>, vector<32x8xf32> -> vector<32x8xf32>
      %c0_70 = arith.constant 0 : index
      %c6_71 = arith.constant 6 : index
      %109 = vector.load %arg9[%c0_70, %c6_71] : memref<32x8xf32, #tpu.memory_space<vmem>>, vector<32x1xf32>
      %110 = vector.broadcast %109 : vector<32x1xf32> to vector<32x8xf32>
      %111 = arith.addf %108, %110 : vector<32x8xf32>
      %cst_72 = arith.constant dense<0.000000e+00> : vector<8x8xf32>
      %112 = tpu.matmul %16, %111, %cst_72 {dimension_numbers = #tpu.dot_dimension_numbers<[1], [0], [0], [1], [0, 0, 1, 1], [], []>} : vector<8x32xf32>, vector<32x8xf32>, vector<8x8xf32> -> vector<8x8xf32>
      %113 = vector.extract_strided_slice %27 {offsets = [6, 0], sizes = [1, 8], strides = [1, 1]} : vector<8x8xf32> to vector<1x8xf32>
      %114 = vector.broadcast %113 : vector<1x8xf32> to vector<8x8xf32>
      %115 = arith.addf %112, %114 : vector<8x8xf32>
      %c0_73 = arith.constant 0 : index
      %c0_74 = arith.constant 0 : index
      %c48 = arith.constant 48 : index
      %116 = vector.load %arg12[%c0_73, %c0_74, %c48] : memref<1x8x64xf32, #tpu.memory_space<vmem>>, vector<1x8x8xf32>
      %117 = vector.shape_cast %116 : vector<1x8x8xf32> to vector<8x8xf32>
      %118 = vector.shape_cast %115 : vector<8x8xf32> to vector<1x8x8xf32>
      tpu.vector_store %arg12[%c0_73, %c0_74, %c48], %118 {strides = array<i32>} : memref<1x8x64xf32, #tpu.memory_space<vmem>>, vector<1x8x8xf32>,
      %c7 = arith.constant 7 : index
      %c0_75 = arith.constant 0 : index
      %c0_76 = arith.constant 0 : index
      %119 = vector.load %arg8[%c7, %c0_75, %c0_76] : memref<8x32x32xf32, #tpu.memory_space<vmem>>, vector<1x32x32xf32>
      %120 = vector.shape_cast %119 : vector<1x32x32xf32> to vector<32x32xf32>
      %cst_77 = arith.constant dense<0.000000e+00> : vector<32x8xf32>
      %121 = tpu.matmul %120, %22, %cst_77 {dimension_numbers = #tpu.dot_dimension_numbers<[1], [0], [0], [1], [0, 0, 1, 1], [], []>} : vector<32x32xf32>, vector<32x8xf32>, vector<32x8xf32> -> vector<32x8xf32>
      %c0_78 = arith.constant 0 : index
      %c7_79 = arith.constant 7 : index
      %122 = vector.load %arg9[%c0_78, %c7_79] : memref<32x8xf32, #tpu.memory_space<vmem>>, vector<32x1xf32>
      %123 = vector.broadcast %122 : vector<32x1xf32> to vector<32x8xf32>
      %124 = arith.addf %121, %123 : vector<32x8xf32>
      %cst_80 = arith.constant dense<0.000000e+00> : vector<8x8xf32>
      %125 = tpu.matmul %16, %124, %cst_80 {dimension_numbers = #tpu.dot_dimension_numbers<[1], [0], [0], [1], [0, 0, 1, 1], [], []>} : vector<8x32xf32>, vector<32x8xf32>, vector<8x8xf32> -> vector<8x8xf32>
      %126 = vector.extract_strided_slice %27 {offsets = [7, 0], sizes = [1, 8], strides = [1, 1]} : vector<8x8xf32> to vector<1x8xf32>
      %127 = vector.broadcast %126 : vector<1x8xf32> to vector<8x8xf32>
      %128 = arith.addf %125, %127 : vector<8x8xf32>
      %c0_81 = arith.constant 0 : index
      %c0_82 = arith.constant 0 : index
      %c56 = arith.constant 56 : index
      %129 = vector.load %arg12[%c0_81, %c0_82, %c56] : memref<1x8x64xf32, #tpu.memory_space<vmem>>, vector<1x8x8xf32>
      %130 = vector.shape_cast %129 : vector<1x8x8xf32> to vector<8x8xf32>
      %131 = vector.shape_cast %128 : vector<8x8xf32> to vector<1x8x8xf32>
      tpu.vector_store %arg12[%c0_81, %c0_82, %c56], %131 {strides = array<i32>} : memref<1x8x64xf32, #tpu.memory_space<vmem>>, vector<1x8x8xf32>,
    } else {
    }
    %true = arith.constant true
    %7 = arith.xori %4, %true : i1
    %8 = arith.extui %7 : i1 to i32
    %c0_i32_0 = arith.constant 0 : i32
    %9 = arith.cmpi ne, %8, %c0_i32_0 : i32
    scf.if %9 {
      %cst = arith.constant 0.000000e+00 : f32
      %10 = vector.broadcast %cst : f32 to vector<1x8x64xf32>
      %c0 = arith.constant 0 : index
      %c0_1 = arith.constant 0 : index
      %c0_2 = arith.constant 0 : index
      %11 = vector.load %arg12[%c0, %c0_1, %c0_2] : memref<1x8x64xf32, #tpu.memory_space<vmem>>, vector<1x8x64xf32>
      tpu.vector_store %arg12[%c0, %c0_1, %c0_2], %10 {strides = array<i32>} : memref<1x8x64xf32, #tpu.memory_space<vmem>>, vector<1x8x64xf32>,
    } else {
    }
    return
  }
  func.func @transform_0(%arg0: i32, %arg1: i32, %arg2: memref<2xi32, #tpu.memory_space<smem>>) -> (i32, i32, i32) {
    %c0_i32 = arith.constant 0 : i32
    %c0_i32_0 = arith.constant 0 : i32
    %c0_i32_1 = arith.constant 0 : i32
    return %arg0, %c0_i32, %c0_i32_0 : i32, i32, i32
  }
  func.func @transform_1(%arg0: i32, %arg1: i32, %arg2: memref<2xi32, #tpu.memory_space<smem>>) -> (i32, i32) {
    %c0_i32 = arith.constant 0 : i32
    %c0_i32_0 = arith.constant 0 : i32
    %c0_i32_1 = arith.constant 0 : i32
    return %c0_i32, %c0_i32_0 : i32, i32
  }
  func.func @transform_2(%arg0: i32, %arg1: i32, %arg2: memref<2xi32, #tpu.memory_space<smem>>) -> (i32, i32) {
    %c0_i32 = arith.constant 0 : i32
    %c0_i32_0 = arith.constant 0 : i32
    %c0_i32_1 = arith.constant 0 : i32
    return %c0_i32, %c0_i32_0 : i32, i32
  }
  func.func @transform_3(%arg0: i32, %arg1: i32, %arg2: memref<2xi32, #tpu.memory_space<smem>>) -> (i32, i32) {
    %c0_i32 = arith.constant 0 : i32
    %c0_i32_0 = arith.constant 0 : i32
    %c0_i32_1 = arith.constant 0 : i32
    return %c0_i32, %c0_i32_0 : i32, i32
  }
  func.func @transform_4(%arg0: i32, %arg1: i32, %arg2: memref<2xi32, #tpu.memory_space<smem>>) -> (i32, i32) {
    %c0_i32 = arith.constant 0 : i32
    %c0_i32_0 = arith.constant 0 : i32
    %c0_i32_1 = arith.constant 0 : i32
    return %c0_i32, %c0_i32_0 : i32, i32
  }
  func.func @transform_5(%arg0: i32, %arg1: i32, %arg2: memref<2xi32, #tpu.memory_space<smem>>) -> (i32, i32, i32) {
    %c0_i32 = arith.constant 0 : i32
    %c0_i32_0 = arith.constant 0 : i32
    %c0_i32_1 = arith.constant 0 : i32
    %c0_i32_2 = arith.constant 0 : i32
    return %c0_i32, %c0_i32_0, %c0_i32_1 : i32, i32, i32
  }
  func.func @transform_6(%arg0: i32, %arg1: i32, %arg2: memref<2xi32, #tpu.memory_space<smem>>) -> (i32, i32) {
    %c0_i32 = arith.constant 0 : i32
    %c0_i32_0 = arith.constant 0 : i32
    %c0_i32_1 = arith.constant 0 : i32
    return %c0_i32, %c0_i32_0 : i32, i32
  }
  func.func @transform_7(%arg0: i32, %arg1: i32, %arg2: memref<2xi32, #tpu.memory_space<smem>>) -> (i32, i32) {
    %c0_i32 = arith.constant 0 : i32
    %c0_i32_0 = arith.constant 0 : i32
    %c0_i32_1 = arith.constant 0 : i32
    return %c0_i32, %c0_i32_0 : i32, i32
  }
  func.func @transform_8(%arg0: i32, %arg1: i32, %arg2: memref<2xi32, #tpu.memory_space<smem>>) -> (i32, i32) {
    %c0_i32 = arith.constant 0 : i32
    %c0_i32_0 = arith.constant 0 : i32
    %c0_i32_1 = arith.constant 0 : i32
    return %c0_i32, %c0_i32_0 : i32, i32
  }
  func.func @transform_9(%arg0: i32, %arg1: i32, %arg2: memref<2xi32, #tpu.memory_space<smem>>) -> (i32, i32, i32) {
    %c0_i32 = arith.constant 0 : i32
    %c0_i32_0 = arith.constant 0 : i32
    return %arg0, %arg1, %c0_i32 : i32, i32, i32
  }
}

</mosaic_0001>

<bundles_post_ra>
// kernel: tpu_custom_call.1
= control target key start
LH: loop header
LB: loop body
LE: loop exit
PB: predicated region body
PF: predicated region fallthrough
CT: control target
= control target key end

     0   :  { %s1793_s16 = smov [#allocation3]   ;;  %s2237_s0 = inlined_call_operand.vmem [shape: s32[2], index: 0, kind: input, shape index: {}]   ;;  %s2238_s1 = inlined_call_operand.hbm [shape: f32[2,8,32], index: 1, kind: input, shape index: {}]   ;;  %s2239_s2 = inlined_call_operand.vmem [shape: f32[32,32], index: 2, kind: input, shape index: {}]   ;;  %s2240_s3 = inlined_call_operand.vmem [shape: f32[1,32], index: 3, kind: input, shape index: {}]   ;;  %s2241_s4 = inlined_call_operand.hbm [shape: f32[32,32], index: 4, kind: input, shape index: {}]   ;;  %s2242_s5 = inlined_call_operand.vmem [shape: f32[1,32], index: 5, kind: input, shape index: {}]   ;;  %s2243_s6 = inlined_call_operand.hbm [shape: f32[8,32,32], index: 6, kind: input, shape index: {}]   ;;  %s2244_s7 = inlined_call_operand.vmem [shape: f32[32,8], index: 7, kind: input, shape index: {}]   ;;  %s2245_s8 = inlined_call_operand.vmem [shape: f32[8,32], index: 8, kind: input, shape index: {}]   ;;  %s2246_s9 = inlined_call_operand.vmem [shape: f32[8,1], index: 9, kind: input, shape index: {}]   ;;  %s2247_s10 = inlined_call_operand.hbm [shape: f32[2,8,64], index: 10, kind: output, shape index: {}]  }
   0x1   :  { %2250 = sst [smem:[#allocation17_spill]] %s2241_s4  ;;  %s16_s15 = sshll.u32 %s2237_s0, 4  ;;  %s17_s15 = int_to_ptr.vmem [resolvable:$true] %s16_s15 }
   0x2   :  { %2251 = sst [smem:[#allocation18_spill]] %s2243_s6 }
   0x3   :  { %19 = dma.vmem_to_smem %s17_s15, 16, %s1793_s16, [#allocation2] }
   0x4   :  { %1755 = dma.done.wait [#allocation2], 16 }
   0x5   :  { %1756 = vsyncadd [#allocation2], 4294967280 }
   0x6   :  { %22 = sfence }
   0x7   :  { %23 = vsyncpa [#allocation5], 0 }
   0x8   :  { %25 = vsyncpa [#allocation5 + $0x1], 0 }
   0x9   :  { %26 = vsyncpa [#allocation8], 0 }
   0xa   :  { %27 = vsyncpa [#allocation6], 0 }
   0xb   :  { %29 = vsyncpa [#allocation6 + $0x1], 0  ;;  %s1872_s17 = smov 0   ;;  %s1874_s18 = smov 0  }
   0xc   :  { %s1876_s19 = smov 0   ;;  %s1878_s20 = smov 0  }
   0xd   :  { %s1880_s0 = smov 0   ;;  %s1882_s21 = smov 0  }
   0xe LB: > { %2252 = sst [smem:[#allocation15_spill]] %s1787_s0  ;;  %s1401_s22 = sadd.s32 4294967295, %s1791_s21   ;;  %s1791_s21 = sphi %s1882_s21, %s35_s21   ;;  %s1787_s0 = sphi %s1880_s0, %s2262_s0   ;;  %s1783_s20 = sphi %s1878_s20, %s2261_s20   ;;  %s1779_s19 = sphi %s1876_s19, %s2265_s19   ;;  %s1775_s18 = sphi %s1874_s18, %s2264_s18   ;;  %s1771_s17 = sphi %s1872_s17, %s2263_s17  }
   0xf   : > { %p1403_p0 = scmp.ge.s32.totalorder %s1791_s21, 1  ;;  %p1906_p1 = scmp.eq.s32.totalorder %s1401_s22, 0 }
  0x10   : > { %p274_p2 = scmp.lt.s32.totalorder %s1791_s21, 3  ;;  %s2254_s4 = sld [smem:[#allocation17_spill]] }
  0x11   : > { %s1794_s28 = smov [#allocation7]   ;;  %p1406_p6 = scmp.ge.s32.totalorder %s1791_s21, 2 }
  0x12   : > { %p1914_p3 = pnand %p1403_p0, %p274_p2  ;;  %s293_s29 = sshll.u32 %s1794_s28, 4  ;;  %s294_s29 = int_to_ptr.vmem [resolvable:$true] %s293_s29 }
  0x13   : > { %s2256_s6 = sld [smem:[#allocation18_spill]]  ;;  %s1795_s13 = smov 128  }
  0x14   : > { %p1486_p4 = pneg %p1914_p3  ;;  %s1796_s14 = smov 8  }
  0x15   : > { %s1797_s15 = smov [#allocation9]   ;;  %s47_s24 = sadd.s32 1, %s1787_s0 }
  0x16   : > { %s291_s26 = sshll.u32 %s2254_s4, 4  ;;  %p1487_p5 = pnand %p1486_p4, %p1906_p1  ;;  %s292_s26 = int_to_ptr.hbm [resolvable:$true] %s291_s26 }
  0x17   : > { %s310_s16 = sshll.u32 %s1797_s15, 4  ;;  %s1402_s25 = sadd.s32 4294967294, %s1791_s21   ;;  %s311_s16 = int_to_ptr.vmem [resolvable:$true] %s310_s16 }
  0x18   : > { %1489 = dma.hbm_to_vmem [thread:$0]  (!%p1487_p5), %s292_s26, 512, %s294_s29, [#allocation8], %s1795_s13, %s1795_s13, %s1796_s14  }
  0x19   : > { %s308_s12 = sshll.u32 %s2256_s6, 4  ;;  %p49_p7 = scmp.ge.s32.totalorder %s47_s24, 2  ;;  %s309_s12 = int_to_ptr.hbm [resolvable:$true] %s308_s12 }
  0x1a   : > { %1492 = dma.hbm_to_vmem [thread:$0]  (!%p1487_p5), %s309_s12, 4096, %s311_s16, [#allocation8], %s1795_s13, %s1795_s13, %s1796_s14  }
  0x1b   : > { %s54_s28 = sadd.s32 1, %s1779_s19  ;;  %p61_p8 = scmp.ne.s32.totalorder %s1779_s19, %s1775_s18 }
  0x1c   : > { %s2267_s24 = smov (%p49_p7, %s47_s24), 0  ;;  %p62_p9 = scmp.eq.s32.totalorder %s1791_s21, 0 }
  0x1d   : > { %2257 = sst [smem:[#allocation16_spill]] %s2267_s24  ;;  %p67_p10 = scmp.ne.s32.totalorder %s1775_s18, %s1771_s17 }
  0x1e   : > { %s51_s26 = ssub.s32 %s1787_s0, %s2267_s24  ;;  %p261_p11 = scmp.eq.s32.totalorder %s1401_s22, 1 }
  0x1f   : > { %p52_p12 = scmp.eq.s32.totalorder %s51_s26, 0  ;;  %p1942_p13 = por %p1906_p1, %p67_p10 }
  0x20   : > { %p1946_p0 = por %p261_p11, %p61_p8  ;;  %p267_p2 = scmp.eq.s32.totalorder %s1402_s25, 1 }
  0x21   : > { %s1951_s11 = scalar_select %p52_p12, %s1779_s19, %s54_s28  }
  0x22   : > { %p63_p4 = por %p62_p9, %p61_p8  ;;  %p1953_p5 = por %p267_p2, %p67_p10 }
  0x23   : > { %s333_s13 = sand.u32 1, %s1779_s19   ;;  %s1408_s22 = sshll.u32 %s1787_s0, 3 }
  0x24   : > { %p1503_p7 = scmp.lt.s32.totalorder %s1791_s21, 2  ;;  %s1407_s14 = sshll.u32 %s333_s13, 3 }
  0x25   : > { %s341_s26 = scalar_lea.hbm %s2238_s1, %s1408_s22  ;;  %s337_s6 = scalar_lea.vmem [#allocation4], %s1407_s14 }
  0x26   : > { %s343_s4 = sshll.u32 %s341_s26, 4  ;;  %s345_s24 = sshll.u32 %s337_s6, 4  ;;  %s344_s4 = int_to_ptr.hbm [resolvable:$true] %s343_s4  ;;  %s346_s24 = int_to_ptr.vmem [resolvable:$true] %s345_s24 }
  0x27   : > { %p1494_p11 = pnand %p1503_p7, %p63_p4  ;;  %s334_s25 = scalar_lea.sflag [#allocation5], %s333_s13 }
  0x28   : > { %354 = sbr.rel (%p1914_p3) target bundleno = 1184 (0x4a0), region = 56  ;;  %s1966_s28 = sand.u32 (!%p1914_p3), 1, %s1775_s18  }
  0x29   : > { %1496 = dma.hbm_to_vmem [thread:$0]  (!%p1494_p11), %s344_s4, 128, %s346_s24, %s334_s25  }
  0x2a   : > { %s1410_s0 = sshll.u32 (!%p1914_p3), %s1966_s28, 3  ;;  %s357_s15 = scalar_lea.sflag (!%p1914_p3), [#allocation5], %s1966_s28 }
  0x2b   : > { %s360_s22 = scalar_lea.vmem (!%p1914_p3), [#allocation4], %s1410_s0 }
  0x2d   : > { %1758 = dma.done.wait (%p1942_p13), %s357_s15, 128  }
  0x2e   : > { %1760 = vsyncadd (%p1942_p13), %s357_s15, 4294967168 }
  0x2f   : > { %1762 = dma.done.wait (%p1906_p1), [#allocation8], 4608  }
  0x30   : > { %1764 = vsyncadd (%p1906_p1), [#allocation8], 4294962688  ;;  %s1979_s4 = sld [smem:[#allocation3 + %s1783_s20]]  ;;  %s1981_s6 = scalar_lea.vmem [#allocation10], %s1410_s0 }
  0x36   : > { %p1415_p3 = scmp.le.s32.totalorder %s1979_s4, 0 }
  0x37   : > { %s1806_s27 = smov (!%p1415_p3), 8   ;;  %s1807_s24 = smov (!%p1415_p3), 16  }
  0x38   : > { %411 = sbr.rel (%p1415_p3) target bundleno = 1160 (0x488), region = 72  ;;  %s1808_s29 = smov (!%p1415_p3), 40  }
  0x39   : > { %s1809_s23 = smov (!%p1415_p3), 24   ;;  %s1810_s13 = smov (!%p1415_p3), 48  }
  0x3a   : > { %s1811_s0 = smov (!%p1415_p3), 32   ;;  %s1812_s14 = smov (!%p1415_p3), 56  }
  0x3d   : > { %v448_v0 = vld [vmem:[#allocation7 + $0x18] sm:$0xff]  ;;  %v447_v1 = vld [vmem:[#allocation7 + $0x10] sm:$0xff]  ;;  %v416_v2 = vld [vmem:[%s2239_s2 + $0x18] sm:$0xff]  ;;  %vm421_vm0 = vcmask 261120   ;;  %v1798_v9 = vmov 0   ;;  %v1799_v15 = vmov 1  }
  0x3e   : > { %465 = vmatpush.msra.mxu2 %v448_v0  ;;  %v446_v3 = vld [vmem:[#allocation7 + $0x8] sm:$0xff]  ;;  %437 = vmatpush.msra.mxu0 %v416_v2  ;;  %v415_v4 = vld [vmem:[%s2239_s2 + $0x10] sm:$0xff]  ;;  %v414_v5 = vld [vmem:[%s2239_s2 + $0x8] sm:$0xff]  ;;  %v1800_v20 = vmov 2   ;;  %v1801_v23 = vmov 5   ;;  %v1802_v28 = vmov 3  }
  0x3f   : > { %v445_v6 = vld [vmem:[#allocation7] sm:$0xff]  ;;  %v412_v7 = vld [vmem:[%s360_s22] sm:$0xff]  ;;  %1577 = vset.pattern.permute.xlu1 %v1798_v9  ;;  %1576 = vset.pattern.permute.xlu0 %v1798_v9  ;;  %v2018_v13 = vld [vmem:[%s2244_s7 + $0x18] sm:$0xff]  ;;  %v1803_v29 = vmov 6   ;;  %v1804_v30 = vmov 4   ;;  %v1805_v34 = vmov 7  }
  0x40   : > { %466 = vmatpush.msra.mxu2 %v447_v1  ;;  %438 = vmatpush.msra.mxu0 %v415_v4  ;;  %v413_v8 = vld [vmem:[%s2239_s2] sm:$0xff]  ;;  %v2003_v10 = vld [vmem:[%s2244_s7 + $0x8] sm:$0xff]  ;;  %v506_v17 = vld [vmem:[#allocation9] sm:$0xff]  ;;  %vm599_vm1 = vcmask 64512   ;;  %vm696_vm2 = vcmask 130112   ;;  %vm793_vm3 = vcmask 195712  }
  0x41   : > { %521 = vperm.xlu1 %1577, %v2003_v10   ;;  %v2009_v11 = vld [vmem:[%s2244_s7] sm:$0xff]  ;;  %531 = vperm.xlu0 %1576, %v2018_v13   ;;  %v602_v18 = vld [vmem:[#allocation9 + $0x20] sm:$0xff]  ;;  %v507_v21 = vld [vmem:[#allocation9 + $0x8] sm:$0xff]  ;;  %vm890_vm4 = vcmask 261312   ;;  %vm987_vm5 = vcmask 326912   ;;  %vm1084_vm6 = vcmask 392512  }
  0x42   : > { %467 = vmatpush.msra.mxu2 %v446_v3  ;;  %439 = vmatpush.msra.mxu0 %v414_v5  ;;  %v1599_v12 = vld [vmem:[%s2242_s5] ss:$0 sm:$0xff]  ;;  %v2034_v19 = vld [vmem:[%s2244_s7 + $0x10] sm:$0xff]  ;;  %v603_v22 = vld [vmem:[#allocation9 + $0x28] sm:$0xff]  ;;  %vm1181_vm7 = vcmask 458112   ;;  %vm1278_vm8 = vcmask 523712  }
  0x43   : > { %1578 = vset.pattern.permute.xlu2 %v1799_v15  ;;  %v508_v24 = vld [vmem:[#allocation9 + $0x10] sm:$0xff]  ;;  %v509_v26 = vld [vmem:[#allocation9 + $0x18] sm:$0xff]  ;;  %v699_v61 = vld [vmem:[#allocation9 + $0x40] sm:$0xff] }
  0x44   : > { %468 = vmatpush.msra.mxu2 %v445_v6  ;;  %440 = vmatpush.msra.mxu0 %v413_v8  ;;  %v604_v25 = vld [vmem:[#allocation9 + $0x30] sm:$0xff]  ;;  %v605_v27 = vld [vmem:[#allocation9 + $0x38] sm:$0xff]  ;;  %v700_v62 = vld [vmem:[#allocation9 + $0x48] sm:$0xff] }
  0x45   : > { %1417 = vmatmul.msk.f32.vlgmr.msra.gmra.mxu2 %vm421_vm0, %v412_v7  ;;  %1416 = vmatmul.msk.f32.vlgmr.msra.gmra.mxu0 %vm421_vm0, %v412_v7  ;;  %v473_v32 = vld [vmem:[%s2245_s8] sm:$0xff]  ;;  %v702_v1 = vld [vmem:[#allocation9 + $0x58] sm:$0xff]  ;;  %v990_v3 = vld [vmem:[#allocation9 + $0xa0] sm:$0xff] }
  0x46   : > { %627 = vperm.xlu2 %1578, %v2018_v13   ;;  %v474_v39 = vld [vmem:[%s2246_s9] sm:$0xff]  ;;  %v991_v5 = vld [vmem:[#allocation9 + $0xa8] sm:$0xff] }
  0x47   : > { %v1600_v51 = vld [vmem:[%s2240_s3] ss:$0 sm:$0xff] }
  0x48   : > { %v701_v0 = vld [vmem:[#allocation9 + $0x50] sm:$0xff] }
  0x49   : > { %516 = vperm.xlu1 %1577, %v2009_v11   ;;  %526 = vperm.xlu0 %1576, %v2034_v19   ;;  %v992_v7 = vld [vmem:[#allocation9 + $0xb0] sm:$0xff] }
  0x4e   : > { %622 = vperm.xlu2 %1578, %v2034_v19  }
  0x51   : > { %1580 = vset.pattern.permute.xlu1 %v1799_v15  ;;  %1579 = vset.pattern.permute.xlu0 %v1799_v15 }
  0x52   : > { %612 = vperm.xlu1 %1580, %v2009_v11   ;;  %617 = vperm.xlu0 %1579, %v2003_v10  }
  0x56   : > { %1581 = vset.pattern.permute.xlu2 %v1800_v20 }
  0x57   : > { %724 = vperm.xlu2 %1581, %v2018_v13  }
  0x5a   : > { %1582 = vset.pattern.permute.xlu1 %v1800_v20  ;;  %1583 = vset.pattern.permute.xlu0 %v1800_v20 }
  0x5b   : > { %719 = vperm.xlu1 %1582, %v2034_v19   ;;  %709 = vperm.xlu0 %1583, %v2009_v11  }
  0x5f   : > { %714 = vperm.xlu2 %1581, %v2003_v10  }
  0x63   : > { %1584 = vset.pattern.permute.xlu1 %v1801_v23  ;;  %1586 = vset.pattern.permute.xlu0 %v1802_v28 }
  0x64   : > { %1015 = vperm.xlu1 %1584, %v2018_v13   ;;  %821 = vperm.xlu0 %1586, %v2018_v13  }
  0x67   : > { %1585 = vset.pattern.permute.xlu2 %v1801_v23 }
  0x68   : > { %1010 = vperm.xlu2 %1585, %v2034_v19  }
  0x6c   : > { %1005 = vperm.xlu1 %1584, %v2003_v10   ;;  %1590 = vset.pattern.permute.xlu0 %v1803_v29 }
  0x6d   : > { %1107 = vperm.xlu0 %1590, %v2034_v19  }
  0x70   : > { %1000 = vperm.xlu2 %1585, %v2009_v11  }
  0x74   : > { %1587 = vset.pattern.permute.xlu1 %v1802_v28 }
  0x75   : > { %816 = vperm.xlu1 %1587, %v2034_v19   ;;  %1594 = vset.pattern.permute.xlu0 %v1804_v30 }
  0x76   : > { %908 = vperm.xlu0 %1594, %v2003_v10  }
  0x78   : > { %1588 = vset.pattern.permute.xlu2 %v1802_v28 }
  0x79   : > { %811 = vperm.xlu2 %1588, %v2003_v10  }
  0x7d   : > { %806 = vperm.xlu1 %1587, %v2009_v11  }
  0x7e   : > { %1597 = vset.pattern.permute.xlu0 %v1805_v34 }
  0x7f   : > { %1194 = vperm.xlu0 %1597, %v2009_v11  }
  0x81   : > { %1589 = vset.pattern.permute.xlu2 %v1803_v29 }
  0x82   : > { %1112 = vperm.xlu2 %1589, %v2018_v13  }
  0x85   : > { %1591 = vset.pattern.permute.xlu1 %v1803_v29 }
  0x86   : > { %1102 = vperm.xlu1 %1591, %v2003_v10  }
  0x8a   : > { %1097 = vperm.xlu2 %1589, %v2009_v11  }
  0x8e   : > { %1592 = vset.pattern.permute.xlu1 %v1804_v30 }
  0x8f   : > { %918 = vperm.xlu1 %1592, %v2018_v13  }
  0x92   : > { %1593 = vset.pattern.permute.xlu2 %v1804_v30 }
  0x93   : > { %913 = vperm.xlu2 %1593, %v2034_v19  }
  0x97   : > { %903 = vperm.xlu1 %1592, %v2009_v11  }
  0x9b   : > { %1595 = vset.pattern.permute.xlu2 %v1805_v34 }
  0x9c   : > { %1209 = vperm.xlu2 %1595, %v2018_v13  }
  0x9f   : > { %1596 = vset.pattern.permute.xlu1 %v1805_v34 }
  0xa0   : > { %1204 = vperm.xlu1 %1596, %v2034_v19   ;;  %v628_v40 = vpop.permute.xlu2 %627 }
  0xa4   : > { %1199 = vperm.xlu2 %1595, %v2003_v10  }
  0xa8   : > { %1598 = vset.pattern.permute.xlu1 %v1798_v9  ;;  %v623_v46 = vpop.permute.xlu2 %622  ;;  %v993_v9 = vld [vmem:[#allocation9 + $0xb8] sm:$0xff] }
  0xa9   : > { %477 = vperm.xlu1 %1598, %v474_v39  }
  0xb3   : > { %v532_v36 = vpop.permute.xlu0 %531  ;;  %v522_v37 = vpop.permute.xlu1 %521 }
  0xbb   : > { %v527_v42 = vpop.permute.xlu0 %526  ;;  %v517_v44 = vpop.permute.xlu1 %516 }
  0xc2   : > { %v442_v31 = vpop.f32.mrf.mxu0 }
  0xc3   : > { %v2082_v56 = vadd.f32 %v1600_v51, %v442_v31 }
  0xc4   : > { %v618_v48 = vpop.permute.xlu0 %617  ;;  %v613_v52 = vpop.permute.xlu1 %612 }
  0xc8   : > { %v470_v14 = vpop.f32.mrf.mxu2 }
  0xc9   : > { %v2021_v16 = vadd.f32 %v1599_v12, %v470_v14 }
  0xcb   : > { %1418 = vmatpush.xpose.msk.msrb.mxu2 %vm421_vm0, %v2021_v16  ;;  %1420 = vmatpush.xpose.msk.msra.mxu3 %vm421_vm0, %v2021_v16 }
  0xcc   : > { %1426 = vmatpush.xpose.msk.msrb.mxu0 %vm421_vm0, %v2021_v16 }
  0xcd   : > { %v720_v63 = vpop.permute.xlu1 %719 }
  0xce   : > { %1421 = vmatmul.msk.f32.vlgmr.msra.gmra.mxu3 %vm421_vm0, %v506_v17  ;;  %1419 = vmatmul.msk.f32.vlgmr.msrb.gmra.mxu2 %vm421_vm0, %v473_v32 }
  0xcf   : > { %1427 = vmatmul.msk.f32.vlgmr.msrb.gmra.mxu0 %vm421_vm0, %v602_v18  ;;  %v725_v18 = vpop.permute.xlu2 %724 }
  0xd6   : > { %1422 = vmatmul.msk.f32.gmra.mxu3 %vm421_vm0, %v507_v21  ;;  %v2095_v2 = vpop.permute.xlu1 %1015 }
  0xd7   : > { %1428 = vmatmul.msk.f32.gmra.mxu0 %vm421_vm0, %v603_v22  ;;  %v715_v22 = vpop.permute.xlu2 %714 }
  0xde   : > { %1423 = vmatmul.msk.f32.gmra.mxu3 %vm421_vm0, %v508_v24  ;;  %v2099_v4 = vpop.permute.xlu1 %1005 }
  0xdf   : > { %1429 = vmatmul.msk.f32.gmra.mxu0 %vm421_vm0, %v604_v25 }
  0xe6   : > { %1424 = vmatmul.msk.f32.gmra.mxu3 %vm421_vm0, %v509_v26  ;;  %v1011_v26 = vpop.permute.xlu2 %1010 }
  0xe7   : > { %1430 = vmatmul.msk.f32.gmra.mxu0 %vm421_vm0, %v605_v27  ;;  %v2102_v6 = vpop.permute.xlu1 %816 }
  0xee   : > { %v1001_v28 = vpop.permute.xlu2 %1000 }
  0xef   : > { %v2105_v8 = vpop.permute.xlu1 %806 }
  0xf6   : > { %v2121_v30 = vpop.permute.xlu2 %811 }
  0xf8   : > { %v2108_v10 = vpop.permute.xlu1 %1102 }
 0x101   : > { %v2110_v11 = vpop.permute.xlu1 %918 }
 0x109   : > { %v2112_v12 = vpop.permute.xlu1 %903 }
 0x112   : > { %v2114_v13 = vpop.permute.xlu1 %1204 }
 0x11b   : > { %v478_v14 = vpop.permute.xlu1 %477 }
 0x14c   : > { %v659_v33 = vpop.f32.mrf.mxu0 }
 0x14d   : > { %v660_v55 = vadd.f32 %v659_v33, %v613_v52  ;;  %v2123_v33 = vpop.permute.xlu2 %1112 }
 0x151   : > { %v563_v35 = vpop.f32.mrf.mxu3  ;;  %v503_v15 = vpop.f32.mrf.mxu2 }
 0x152   : > { %v564_v60 = vadd.f32 %v563_v35, %v517_v44  ;;  %v2116_v17 = vadd.f32 %v503_v15, %v478_v14  ;;  %v797_v44 = vld [vmem:[#allocation9 + $0x68] sm:$0xff] }
 0x154   : > { %v662_v38 = vpop.f32.mrf.mxu0  ;;  %v671_v19 = vperm.slane %v2116_v17, 1  ;;  %v575_v23 = vperm.slane %v2116_v17, 0 }
 0x155   : > { %v663_v53 = vadd.f32 %v662_v38, %v618_v48 }
 0x159   : > { %v566_v41 = vpop.f32.mrf.mxu3 }
 0x15a   : > { %v567_v59 = vadd.f32 %v566_v41, %v522_v37  ;;  %v796_v41 = vld [vmem:[#allocation9 + $0x60] sm:$0xff] }
 0x15c   : > { %v665_v43 = vpop.f32.mrf.mxu0 }
 0x15d   : > { %v666_v49 = vadd.f32 %v665_v43, %v623_v46 }
 0x161   : > { %v569_v45 = vpop.f32.mrf.mxu3 }
 0x162   : > { %v570_v58 = vadd.f32 %v569_v45, %v527_v42 }
 0x164   : > { %v668_v47 = vpop.f32.mrf.mxu0 }
 0x165   : > { %v669_v50 = vadd.f32 %v668_v47, %v628_v40  ;;  %v2127_v40 = vpop.permute.xlu2 %1097  ;;  %v798_v47 = vld [vmem:[#allocation9 + $0x70] sm:$0xff] }
 0x167   : > { %684 = vmatpush.msra.mxu1 %v669_v50 }
 0x169   : > { %v572_v54 = vpop.f32.mrf.mxu3  ;;  %685 = vmatpush.msra.mxu1 %v666_v49 }
 0x16a   : > { %v573_v57 = vadd.f32 %v572_v54, %v532_v36  ;;  %v710_v36 = vpop.permute.xlu0 %709 }
 0x16b   : > { %686 = vmatpush.msra.mxu1 %v663_v53  ;;  %v799_v53 = vld [vmem:[#allocation9 + $0x78] sm:$0xff] }
 0x16c   : > { %591 = vmatpush.msra.mxu2 %v573_v57 }
 0x16d   : > { %687 = vmatpush.msra.mxu1 %v660_v55  ;;  %v2132_v43 = vpop.permute.xlu2 %913  ;;  %v1087_v55 = vld [vmem:[#allocation9 + $0xc0] sm:$0xff] }
 0x16e   : > { %592 = vmatpush.msra.mxu2 %v570_v58  ;;  %1431 = vmatmul.msk.f32.vlgmr.msra.gmra.mxu1 %vm421_vm0, %v2082_v56  ;;  %v1088_v58 = vld [vmem:[#allocation9 + $0xc8] sm:$0xff] }
 0x170   : > { %593 = vmatpush.msra.mxu2 %v567_v59  ;;  %v1089_v59 = vld [vmem:[#allocation9 + $0xd0] sm:$0xff] }
 0x172   : > { %594 = vmatpush.msra.mxu2 %v564_v60  ;;  %v1090_v60 = vld [vmem:[#allocation9 + $0xd8] sm:$0xff] }
 0x173   : > { %1425 = vmatmul.msk.f32.vlgmr.msra.gmra.mxu2 %vm421_vm0, %v2082_v56 }
 0x174   : > { %1432 = vmatpush.xpose.msk.msrb.mxu2 %vm421_vm0, %v2021_v16 }
 0x175   : > { %v2135_v46 = vpop.permute.xlu2 %1209 }
 0x178   : > { %1450 = vmatpush.xpose.msk.msra.mxu2 %vm421_vm0, %v2021_v16 }
 0x17b   : > { %1433 = vmatmul.msk.f32.vlgmr.msrb.gmra.mxu2 %vm421_vm0, %v699_v61  ;;  %v768_v61 = vperm.slane %v2116_v17, 2 }
 0x17d   : > { %v2140_v54 = vpop.permute.xlu2 %1199 }
 0x183   : > { %1434 = vmatmul.msk.f32.gmra.mxu2 %vm421_vm0, %v700_v62 }
 0x18b   : > { %1435 = vmatmul.msk.f32.gmra.mxu2 %vm421_vm0, %v701_v0 }
 0x193   : > { %1436 = vmatmul.msk.f32.gmra.mxu2 %vm421_vm0, %v702_v1 }
 0x19b   : > { %1451 = vmatmul.msk.f32.vlgmr.msra.gmra.mxu2 %vm421_vm0, %v990_v3  ;;  %v822_v3 = vpop.permute.xlu0 %821 }
 0x1a3   : > { %1452 = vmatmul.msk.f32.gmra.mxu2 %vm421_vm0, %v991_v5 }
 0x1ab   : > { %1453 = vmatmul.msk.f32.gmra.mxu2 %vm421_vm0, %v992_v7 }
 0x1b3   : > { %1454 = vmatmul.msk.f32.gmra.mxu2 %vm421_vm0, %v993_v9 }
 0x1eb   : > { %v689_v20 = vpop.f32.mrf.mxu1 }
 0x1ec   : > { %v690_v21 = vadd.f32 %v689_v20, %v671_v19 }
 0x1ee   : > { %693 = vrot.lane.b32.xlu2 %v690_v21, %s1806_s27 }
 0x1f6   : > { %v596_v24 = vpop.f32.mrf.mxu2 }
 0x1f7   : > { %v597_v25 = vadd.f32 %v596_v24, %v575_v23  ;;  %v895_v24 = vld [vmem:[#allocation9 + $0x90] sm:$0xff] }
 0x1f9   : > { %600 = vst.msk [vmem:[%s1981_s6] sm:$0xff] %vm599_vm1, %v597_v25  ;;  %v1108_v25 = vpop.permute.xlu0 %1107 }
 0x1fe   : > { %v756_v27 = vpop.f32.mrf.mxu2 }
 0x1ff   : > { %v757_v38 = vadd.f32 %v756_v27, %v710_v36 }
 0x206   : > { %v759_v29 = vpop.f32.mrf.mxu2 }
 0x207   : > { %v760_v37 = vadd.f32 %v759_v29, %v715_v22  ;;  %v894_v22 = vld [vmem:[#allocation9 + $0x88] sm:$0xff] }
 0x20e   : > { %v762_v31 = vpop.f32.mrf.mxu2 }
 0x20f   : > { %v763_v35 = vadd.f32 %v762_v31, %v720_v63  ;;  %v1184_v31 = vld [vmem:[#allocation9 + $0xe0] sm:$0xff] }
 0x216   : > { %v765_v32 = vpop.f32.mrf.mxu2 }
 0x217   : > { %v766_v34 = vadd.f32 %v765_v32, %v725_v18  ;;  %v1185_v32 = vld [vmem:[#allocation9 + $0xe8] sm:$0xff] }
 0x219   : > { %781 = vmatpush.msrb.mxu1 %v766_v34 }
 0x21b   : > { %782 = vmatpush.msrb.mxu1 %v763_v35  ;;  %v865_v35 = vperm.slane %v2116_v17, 3 }
 0x21d   : > { %783 = vmatpush.msrb.mxu1 %v760_v37 }
 0x21e   : > { %v1047_v39 = vpop.f32.mrf.mxu2 }
 0x21f   : > { %784 = vmatpush.msrb.mxu1 %v757_v38  ;;  %v1048_v52 = vadd.f32 %v1047_v39, %v1001_v28 }
 0x220   : > { %1437 = vmatmul.msk.f32.vlgmr.msrb.gmra.mxu1 %vm421_vm0, %v2082_v56 }
 0x221   : > { %1438 = vmatpush.xpose.msk.msra.mxu1 %vm421_vm0, %v2021_v16 }
 0x226   : > { %v1050_v42 = vpop.f32.mrf.mxu2 }
 0x227   : > { %v1051_v51 = vadd.f32 %v1050_v42, %v2099_v4  ;;  %v1059_v4 = vperm.slane %v2116_v17, 5 }
 0x228   : > { %1439 = vmatmul.msk.f32.vlgmr.msra.gmra.mxu1 %vm421_vm0, %v796_v41 }
 0x22e   : > { %v1053_v45 = vpop.f32.mrf.mxu2 }
 0x22f   : > { %v1054_v50 = vadd.f32 %v1053_v45, %v1011_v26 }
 0x230   : > { %1440 = vmatmul.msk.f32.gmra.mxu1 %vm421_vm0, %v797_v44 }
 0x236   : > { %v1056_v48 = vpop.f32.mrf.mxu2 }
 0x237   : > { %v1057_v49 = vadd.f32 %v1056_v48, %v2095_v2 }
 0x238   : > { %1441 = vmatmul.msk.f32.gmra.mxu1 %vm421_vm0, %v798_v47 }
 0x239   : > { %1072 = vmatpush.msra.mxu0 %v1057_v49  ;;  %v909_v49 = vpop.permute.xlu0 %908 }
 0x23b   : > { %1073 = vmatpush.msra.mxu0 %v1054_v50 }
 0x23d   : > { %1074 = vmatpush.msra.mxu0 %v1051_v51 }
 0x23f   : > { %1075 = vmatpush.msra.mxu0 %v1048_v52 }
 0x240   : > { %1442 = vmatmul.msk.f32.gmra.mxu1 %vm421_vm0, %v799_v53  ;;  %1455 = vmatmul.msk.f32.vlgmr.msra.gmra.mxu0 %vm421_vm0, %v2082_v56 }
 0x241   : > { %1456 = vmatpush.xpose.msk.msrb.mxu0 %vm421_vm0, %v2021_v16 }
 0x248   : > { %1457 = vmatmul.msk.f32.vlgmr.msrb.gmra.mxu0 %vm421_vm0, %v1087_v55  ;;  %v694_v57 = vpop.permute.xlu2 %693 }
 0x249   : > { %697 = vst.msk [vmem:[%s1981_s6] sm:$0xff] %vm696_vm2, %v694_v57  ;;  %v1195_v57 = vpop.permute.xlu0 %1194 }
 0x250   : > { %1458 = vmatmul.msk.f32.gmra.mxu0 %vm421_vm0, %v1088_v58 }
 0x258   : > { %1459 = vmatmul.msk.f32.gmra.mxu0 %vm421_vm0, %v1089_v59 }
 0x260   : > { %1460 = vmatmul.msk.f32.gmra.mxu0 %vm421_vm0, %v1090_v60  ;;  %v962_v60 = vperm.slane %v2116_v17, 4 }
 0x29d   : > { %v786_v62 = vpop.f32.mrf.mxu1 }
 0x29e   : > { %v787_v63 = vadd.f32 %v786_v62, %v768_v61 }
 0x2a0   : > { %790 = vrot.lane.b32.xlu1 %v787_v63, %s1807_s24 }
 0x2a5   : > { %v853_v0 = vpop.f32.mrf.mxu1 }
 0x2a6   : > { %v854_v19 = vadd.f32 %v853_v0, %v2105_v8 }
 0x2ad   : > { %v856_v1 = vpop.f32.mrf.mxu1 }
 0x2ae   : > { %v857_v18 = vadd.f32 %v856_v1, %v2121_v30  ;;  %v896_v30 = vld [vmem:[#allocation9 + $0x98] sm:$0xff] }
 0x2b5   : > { %v859_v2 = vpop.f32.mrf.mxu1 }
 0x2b6   : > { %v860_v9 = vadd.f32 %v859_v2, %v2102_v6  ;;  %v893_v6 = vld [vmem:[#allocation9 + $0x80] sm:$0xff] }
 0x2bd   : > { %v862_v5 = vpop.f32.mrf.mxu1  ;;  %v1077_v7 = vpop.f32.mrf.mxu0 }
 0x2be   : > { %v863_v14 = vadd.f32 %v862_v5, %v822_v3  ;;  %v1078_v15 = vadd.f32 %v1077_v7, %v1059_v4 }
 0x2c0   : > { %878 = vmatpush.msrb.mxu3 %v863_v14  ;;  %1081 = vrot.lane.b32.xlu1 %v1078_v15, %s1808_s29 }
 0x2c2   : > { %879 = vmatpush.msrb.mxu3 %v860_v9 }
 0x2c4   : > { %880 = vmatpush.msrb.mxu3 %v857_v18 }
 0x2c5   : > { %v1144_v20 = vpop.f32.mrf.mxu0 }
 0x2c6   : > { %881 = vmatpush.msrb.mxu3 %v854_v19  ;;  %v1145_v29 = vadd.f32 %v1144_v20, %v2127_v40  ;;  %v1156_v40 = vperm.slane %v2116_v17, 6 }
 0x2c7   : > { %1443 = vmatmul.msk.f32.vlgmr.msrb.gmra.mxu3 %vm421_vm0, %v2082_v56 }
 0x2c8   : > { %1444 = vmatpush.xpose.msk.msra.mxu3 %vm421_vm0, %v2021_v16 }
 0x2cd   : > { %v1147_v21 = vpop.f32.mrf.mxu0 }
 0x2ce   : > { %v1148_v28 = vadd.f32 %v1147_v21, %v2108_v10  ;;  %v1186_v10 = vld [vmem:[#allocation9 + $0xf0] sm:$0xff] }
 0x2cf   : > { %1445 = vmatmul.msk.f32.vlgmr.msra.gmra.mxu3 %vm421_vm0, %v893_v6 }
 0x2d5   : > { %v1150_v23 = vpop.f32.mrf.mxu0 }
 0x2d6   : > { %v1151_v27 = vadd.f32 %v1150_v23, %v1108_v25 }
 0x2d7   : > { %1446 = vmatmul.msk.f32.gmra.mxu3 %vm421_vm0, %v894_v22 }
 0x2dd   : > { %v1153_v8 = vpop.f32.mrf.mxu0 }
 0x2de   : > { %v1154_v26 = vadd.f32 %v1153_v8, %v2123_v33  ;;  %v1187_v33 = vld [vmem:[#allocation9 + $0xf8] sm:$0xff] }
 0x2df   : > { %1447 = vmatmul.msk.f32.gmra.mxu3 %vm421_vm0, %v895_v24 }
 0x2e0   : > { %1169 = vmatpush.msrb.mxu1 %v1154_v26 }
 0x2e2   : > { %1170 = vmatpush.msrb.mxu1 %v1151_v27 }
 0x2e4   : > { %1171 = vmatpush.msrb.mxu1 %v1148_v28 }
 0x2e6   : > { %1172 = vmatpush.msrb.mxu1 %v1145_v29 }
 0x2e7   : > { %1448 = vmatmul.msk.f32.gmra.mxu3 %vm421_vm0, %v896_v30  ;;  %1461 = vmatmul.msk.f32.vlgmr.msrb.gmra.mxu1 %vm421_vm0, %v2082_v56 }
 0x2e8   : > { %1462 = vmatpush.xpose.msk.msra.mxu1 %vm421_vm0, %v2021_v16 }
 0x2ef   : > { %1463 = vmatmul.msk.f32.vlgmr.msra.gmra.mxu1 %vm421_vm0, %v1184_v31 }
 0x2f7   : > { %1464 = vmatmul.msk.f32.gmra.mxu1 %vm421_vm0, %v1185_v32 }
 0x2ff   : > { %1465 = vmatmul.msk.f32.gmra.mxu1 %vm421_vm0, %v1186_v10 }
 0x307   : > { %1466 = vmatmul.msk.f32.gmra.mxu1 %vm421_vm0, %v1187_v33 }
 0x312   : > { %v791_v34 = vpop.permute.xlu1 %790 }
 0x313   : > { %794 = vst.msk [vmem:[%s1981_s6] sm:$0xff] %vm793_vm3, %v791_v34 }
 0x332   : > { %v1082_v63 = vpop.permute.xlu1 %1081 }
 0x34a   : > { %v883_v36 = vpop.f32.mrf.mxu3 }
 0x34b   : > { %v884_v37 = vadd.f32 %v883_v36, %v865_v35 }
 0x34d   : > { %887 = vrot.lane.b32.xlu2 %v884_v37, %s1809_s23 }
 0x352   : > { %v950_v16 = vpop.f32.mrf.mxu3 }
 0x353   : > { %v951_v51 = vadd.f32 %v950_v16, %v2112_v12 }
 0x35a   : > { %v953_v38 = vpop.f32.mrf.mxu3 }
 0x35b   : > { %v954_v50 = vadd.f32 %v953_v38, %v909_v49 }
 0x362   : > { %v956_v39 = vpop.f32.mrf.mxu3 }
 0x363   : > { %v957_v45 = vadd.f32 %v956_v39, %v2132_v43 }
 0x364   : > { %v1174_v41 = vpop.f32.mrf.mxu1 }
 0x365   : > { %v1175_v42 = vadd.f32 %v1174_v41, %v1156_v40 }
 0x367   : > { %1178 = vrot.lane.b32.xlu2 %v1175_v42, %s1810_s13 }
 0x36a   : > { %v959_v44 = vpop.f32.mrf.mxu3 }
 0x36b   : > { %v960_v47 = vadd.f32 %v959_v44, %v2110_v11 }
 0x36c   : > { %v1241_v48 = vpop.f32.mrf.mxu1 }
 0x36d   : > { %975 = vmatpush.msrb.mxu3 %v960_v47  ;;  %v1242_v59 = vadd.f32 %v1241_v48, %v1195_v57 }
 0x36f   : > { %976 = vmatpush.msrb.mxu3 %v957_v45 }
 0x371   : > { %977 = vmatpush.msrb.mxu3 %v954_v50 }
 0x373   : > { %978 = vmatpush.msrb.mxu3 %v951_v51 }
 0x374   : > { %1449 = vmatmul.msk.f32.vlgmr.msrb.gmra.mxu3 %vm421_vm0, %v2082_v56  ;;  %v1244_v52 = vpop.f32.mrf.mxu1 }
 0x375   : > { %v1245_v58 = vadd.f32 %v1244_v52, %v2140_v54  ;;  %v1253_v54 = vperm.slane %v2116_v17, 7 }
 0x37c   : > { %v1247_v53 = vpop.f32.mrf.mxu1 }
 0x37d   : > { %v1248_v11 = vadd.f32 %v1247_v53, %v2114_v13 }
 0x384   : > { %v1250_v55 = vpop.f32.mrf.mxu1 }
 0x385   : > { %v1251_v43 = vadd.f32 %v1250_v55, %v2135_v46 }
 0x387   : > { %1266 = vmatpush.msra.mxu3 %v1251_v43 }
 0x389   : > { %1267 = vmatpush.msra.mxu3 %v1248_v11 }
 0x38b   : > { %1268 = vmatpush.msra.mxu3 %v1245_v58 }
 0x38d   : > { %1269 = vmatpush.msra.mxu3 %v1242_v59 }
 0x38e   : > { %1467 = vmatmul.msk.f32.vlgmr.msra.gmra.mxu3 %vm421_vm0, %v2082_v56 }
 0x3a7   : > { %v888_v12 = vpop.permute.xlu2 %887 }
 0x3a8   : > { %891 = vst.msk [vmem:[%s1981_s6] sm:$0xff] %vm890_vm4, %v888_v12 }
 0x3c1   : > { %v1179_v0 = vpop.permute.xlu2 %1178 }
 0x3f7   : > { %v980_v46 = vpop.f32.mrf.mxu3 }
 0x3f8   : > { %v981_v13 = vadd.f32 %v980_v46, %v962_v60 }
 0x3fa   : > { %984 = vrot.lane.b32.xlu0 %v981_v13, %s1811_s0 }
 0x411   : > { %v1271_v61 = vpop.f32.mrf.mxu3 }
 0x412   : > { %v1272_v62 = vadd.f32 %v1271_v61, %v1253_v54 }
 0x414   : > { %1275 = vrot.lane.b32.xlu0 %v1272_v62, %s1812_s14 }
 0x46c   : > { %v985_v56 = vpop.permute.xlu0 %984 }
 0x46d   : > { %988 = vst.msk [vmem:[%s1981_s6] sm:$0xff] %vm987_vm5, %v985_v56 }
 0x46e   : > { %1085 = vst.msk [vmem:[%s1981_s6] sm:$0xff] %vm1084_vm6, %v1082_v63 }
 0x46f   : > { %1182 = vst.msk [vmem:[%s1981_s6] sm:$0xff] %vm1181_vm7, %v1179_v0 }
 0x486   : > { %v1276_v1 = vpop.permute.xlu0 %1275 }
 0x487   : > { %1279 = vst.msk [vmem:[%s1981_s6] sm:$0xff] %vm1278_vm8, %v1276_v1 }
 0x488 PF: > { %p1469_p1 = scmp.gt.s32.totalorder %s1979_s4, 0 }
 0x48a   : > { %1283 = sbr.rel (%p1469_p1) target bundleno = 1169 (0x491), region = 76 }
 0x48f   : > { %vm1284_vm9 = vcmask 523264   ;;  %v1813_v17 = vmov 0.0  }
 0x490   : > { %1285 = vst.msk [vmem:[%s1981_s6] sm:$0xff] %vm1284_vm9, %v1813_v17 }
 0x491 PF: > { %s1471_s16 = sshll.u32 %s1783_s20, 3  ;;  %s1300_s22 = sshll.u32 %s1981_s6, 4  ;;  %s1301_s22 = int_to_ptr.vmem [resolvable:$true] %s1300_s22 }
 0x492   : > { %s1298_s15 = scalar_lea.hbm %s2247_s10, %s1471_s16  ;;  %s1287_s4 = scalar_lea.sflag [#allocation6], %s1966_s28 }
 0x493   : > { %s1302_s27 = sshll.u32 %s1298_s15, 4  ;;  %s1723_s20 = scalar_lea.hbm %s2247_s10, 16  ;;  %s1303_s27 = int_to_ptr.hbm [resolvable:$true] %s1302_s27 }
 0x494   : > { %s1717_s24 = sshra.s32 %s1303_s27, 4  ;;  %s1718_s24 = int_to_ptr.hbm [resolvable:$true] %s1717_s24 }
 0x495   : > { %s1719_s29 = scalar_lea.hbm %s1718_s24, 8  ;;  %p1724_p12 = scmp.lt.s32.totalorder %s1718_s24, %s2247_s10 }
 0x496   : > { %p1720_p8 = scmp.ne.s32.totalorder %s1718_s24, %s1719_s29  ;;  %p1725_p13 = scmp.lt.s32.totalorder %s1723_s20, %s1719_s29 }
 0x498   : > { %p1721_p9 = pnand %p1720_p8, %p1946_p0  ;;  %p1726_p2 = por %p1725_p13, %p1724_p12 }
 0x49a   : > { %p1722_p10 = pneg %p1721_p9 }
 0x49c   : > { %p1727_p4 = pnand %p1726_p2, %p1722_p10 }
 0x49e   : > { %1730 = shalt.err (!%p1727_p4)
}
 0x49f   : > { %1484 = dma.vmem_to_hbm [thread:$0]  (%p1946_p0), %s1301_s22, 128, %s1303_s27, %s1287_s4  }
 0x4a0 PF: > { %s1314_s28 = sand.u32 1, %s1771_s17   ;;  %p1498_p7 = pnand %p1406_p6, %p1953_p5 }
 0x4a1   : > { %s1315_s6 = scalar_lea.sflag [#allocation6], %s1314_s28 }
 0x4a2   : > { %p1499_p11 = pneg %p1498_p7 }
 0x4a4   : > { %1766 = dma.done.wait (%p1499_p11), %s1315_s6, 128  }
 0x4a5   : > { %1768 = vsyncadd (%p1499_p11), %s1315_s6, 4294967168  ;;  %s35_s21 = sadd.s32 1, %s1791_s21   ;;  %s2261_s20 = sld [smem:[#allocation15_spill]] }
 0x4a6   : > { %p32_p3 = scmp.ge.s32.totalorder %s35_s21, 4   ;;  %s2262_s0 = sld [smem:[#allocation16_spill]] }
 0x4a7   : > { %s2263_s17 = smov %s1775_s18  ;;  %s2264_s18 = smov %s1779_s19 }
 0x4a8   : > { %s2265_s19 = smov %s1951_s11  ;;  %34 = sbr.rel (!%p32_p3) target bundleno = 14 (0xe), region = 124 }
 0x4ad   :  { %1321 = vsyncpa [#allocation5], 1 }
 0x4ae   :  { %1323 = vsyncpa [#allocation5 + $0x1], 1 }
 0x4af   :  { %1324 = vsyncpa [#allocation8], 1 }
 0x4b0   :  { %1325 = vsyncpa [#allocation6], 1 }
 0x4b1   :  { %1327 = vsyncpa [#allocation6 + $0x1], 1 }

</bundles_post_ra>
